<compile_context>
chip_gen: v7x
topology: tpu7x:2x2x1
jax: 0.10.0
libtpu: 0.0.40
codegen_flags: <defaults>
</compile_context>

<pallas_src>
import math

import numpy as np
import jax
import jax.numpy as jnp
from jax.experimental import pallas as pl
from jax.experimental.pallas import tpu as pltpu

WINDOW = 11
PAD = WINDOW // 2
SIGMA_G = 1.5           # gaussian window sigma (standard SSIM)
C1 = 0.01 ** 2
C2 = 0.03 ** 2
ALPHA = 1.0
BETA = 0.0
MAX_VAL = 3.0


def _gauss_1d():
    g = [math.exp(-((i - WINDOW // 2) ** 2) / (2.0 * SIGMA_G ** 2))
         for i in range(WINDOW)]
    s = sum(g)
    return [v / s for v in g]


_G1D = _gauss_1d()      # compile-time constants (separable gaussian window)


def _band_matrix_np(n):
    """(n, n) band matrix B with B[r, x] = g[r - x + PAD] on the 11-wide band.

    x @ B == 1-D 'same' (zero padded) gaussian conv along the last axis;
    B @ x == the same conv along the first axis (the window is symmetric).
    Built with numpy at trace time (no on-device constant computation).
    """
    g = np.asarray(_G1D, dtype=np.float64)
    r = np.arange(n)[:, None]
    x = np.arange(n)[None, :]
    d = r - x + PAD
    valid = (d >= 0) & (d < WINDOW)
    return np.where(valid, g[np.clip(d, 0, WINDOW - 1)], 0.0).astype(np.float32)


def _block_diag_np(block, k):
    n = block.shape[0]
    out = np.zeros((k * n, k * n), np.float32)
    for i in range(k):
        out[i * n:(i + 1) * n, i * n:(i + 1) * n] = block
    return out


def _ssim_attention_kernel(step_ref, bh5_ref, bw_ref, tgt_ref, src_ref, out_ref):
    # step_ref : SMEM (1, 1) f32           scalar "step"
    # bh5_ref  : VMEM (5H, 5H) f32         5-way block-diag vertical band matrix
    # bw_ref   : VMEM (L, L)  f32          cb-way block-diag horizontal band matrix
    # tgt_ref  : VMEM (H, L)  f32          lane-dense block, L = cb*W
    # src_ref  : VMEM (H, L)  f32
    # out_ref  : VMEM (1, 8, 128) f32      per-block partial L1 sum (broadcast)
    H, L = tgt_ref.shape
    t = tgt_ref[...]
    s = src_ref[...]
    inv_sigma = 1.0 / (ALPHA * step_ref[0, 0] + BETA)

    # Batch the five depthwise 11x11 gaussian convs (t, s, t*t, s*s, t*s) for
    # all channels of the block into two MXU matmuls: width pass against the
    # block-diagonal (L, L) band matrix, height pass against the 5-way
    # block-diagonal (5H, 5H) band matrix (zero 'same' padding folded in).
    x = jnp.concatenate([t, s, t * t, s * s, t * s], axis=0)            # (5H, L)
    xw = jnp.dot(x, bw_ref[...], preferred_element_type=jnp.float32)    # width
    c = jnp.dot(bh5_ref[...], xw, preferred_element_type=jnp.float32)   # height

    mu1, mu2 = c[0:H], c[H:2 * H]
    e11, e22, e12 = c[2 * H:3 * H], c[3 * H:4 * H], c[4 * H:5 * H]
    mu1_sq = mu1 * mu1
    mu2_sq = mu2 * mu2
    mu12 = mu1 * mu2
    sig1 = e11 - mu1_sq
    sig2 = e22 - mu2_sq
    sig12 = e12 - mu12
    num = (2.0 * mu12 + C1) * (2.0 * sig12 + C2)
    den = (mu1_sq + mu2_sq + C1) * (sig1 + sig2 + C2)
    ssim = num * pl.reciprocal(den, approx=True)
    ssim_map = 1.0 - ssim                       # SSIMLoss(reduction='none')
    z = (ssim_map + 1.0) * inv_sigma
    gauss_map = jnp.exp(-(z * z))               # MAX_VAL hoisted to the wrapper
    # |src*g - tgt*g| == g * |src - tgt|   (g >= 0)
    contrib = gauss_map * jnp.abs(s - t)

    out_ref[...] = jnp.broadcast_to(jnp.sum(contrib), out_ref.shape)


def _chip_budgets():
    """(per-block input budget bytes, scoped vmem_limit_bytes) per chip."""
    kind = ""
    try:
        kind = jax.devices()[0].device_kind.lower()
    except Exception:
        pass
    if "v5" in kind or "v6" in kind:
        return 32 << 20, 96 << 20   # 128 MiB physical VMEM: big blocks, fewer steps
    if "v7" in kind:
        return 12 << 20, 48 << 20   # 64 MiB VMEM / TC: smaller blocks, stay under cap
    return 8 << 20, 32 << 20        # unknown backend: conservative defaults


def _pick_cb(N, H, W, input_budget_bytes, lane_cap=1024):
    """Channels folded into the lane axis per grid block.

    Constraints:
      * cb divides N (no channel padding -> no extra HBM pass from jnp.pad)
      * cb*W % 128 == 0 (lane-dense, unmasked stores) or cb == N (full block)
      * 2 inputs x 2 pipeline buffers of (H, cb*W) f32 fit the input budget
    Preference: largest cb; among those, an even (or single) block count so
    v7x's two TensorCores both get work under dimension_semantics=("parallel",).
    """
    per_chan = 4 * H * W * 4
    divisors = sorted((d for d in range(1, N + 1) if N % d == 0), reverse=True)
    legal = [d for d in divisors
             if ((d * W) % 128 == 0 or d == N)
             and d * per_chan <= input_budget_bytes
             and d * W <= lane_cap]
    if legal:
        for d in legal:
            nb = N // d
            if nb == 1 or nb % 2 == 0:
                return d
        return legal[0]
    return N   # tiny inputs (N*W < 128): a single full-width block is always legal


def ssim_attention_loss(step, tgt, src):
    """tgt, src: (B, C, H, W) float32.  Returns scalar f32 loss."""
    tgt = jnp.asarray(tgt, jnp.float32)
    src = jnp.asarray(src, jnp.float32)
    B, C, H, W = tgt.shape
    N = B * C

    input_budget, vmem_limit = _chip_budgets()
    cb = _pick_cb(N, H, W, input_budget)
    nblocks = N // cb
    L = cb * W

    # Lane-dense layout: fold channels into the lane axis (one wrapper-side
    # HBM pass by XLA).  Column index = channel*W + x.
    t2 = jnp.transpose(tgt.reshape(N, H, W), (1, 0, 2)).reshape(H, N * W)
    s2 = jnp.transpose(src.reshape(N, H, W), (1, 0, 2)).reshape(H, N * W)

    bh5 = jnp.asarray(_block_diag_np(_band_matrix_np(H), 5))     # (5H, 5H)
    bw_blk = jnp.asarray(_block_diag_np(_band_matrix_np(W), cb)) # (L, L)
    # TODO(synk): for H or W >= ~256, replace the dense band matmuls with
    # block-banded strips (skip all-zero tiles) or pltpu.roll 11-tap
    # accumulation; the dense band matrices grow as O(H^2)/O(L^2) VMEM and
    # waste MXU flops there (not needed at the shapes exercised here).

    step_arr = jnp.full((1, 1), step, dtype=jnp.float32)

    partials = pl.pallas_call(
        _ssim_attention_kernel,
        grid=(nblocks,),
        out_shape=jax.ShapeDtypeStruct((nblocks, 8, 128), jnp.float32),
        in_specs=[
            pl.BlockSpec(memory_space=pltpu.MemorySpace.SMEM),   # step scalar
            pl.BlockSpec((5 * H, 5 * H), lambda i: (0, 0)),      # height band (x5)
            pl.BlockSpec((L, L), lambda i: (0, 0)),              # width band (x cb)
            pl.BlockSpec((H, L), lambda i: (0, i)),              # tgt block
            pl.BlockSpec((H, L), lambda i: (0, i)),              # src block
        ],
        out_specs=pl.BlockSpec((1, 8, 128), lambda i: (i, 0, 0)),
        compiler_params=pltpu.CompilerParams(
            dimension_semantics=("parallel",),   # shard blocks over TCs on v7x
            vmem_limit_bytes=vmem_limit,
        ),
    )(step_arr, bh5, bw_blk, t2, s2)

    total = jnp.sum(partials[:, 0, 0])
    return total * jnp.float32(MAX_VAL) / jnp.float32(N * H * W)


def _reference_f64(step, tgt, src):
    """float64 numpy ground truth (independent of any TPU matmul rounding)."""
    t = np.asarray(tgt, dtype=np.float64)
    s = np.asarray(src, dtype=np.float64)
    g = np.asarray(_G1D, dtype=np.float64)
    b, c, h, w = t.shape

    def conv(x):
        xp = np.zeros((b, c, h + 2 * PAD, w + 2 * PAD), dtype=np.float64)
        xp[:, :, PAD:PAD + h, PAD:PAD + w] = x
        tmp = np.zeros((b, c, h + 2 * PAD, w), dtype=np.float64)
        for j in range(WINDOW):
            tmp += g[j] * xp[:, :, :, j:j + w]
        out = np.zeros((b, c, h, w), dtype=np.float64)
        for i in range(WINDOW):
            out += g[i] * tmp[:, :, i:i + h, :]
        return out

    mu1, mu2 = conv(t), conv(s)
    mu1_sq, mu2_sq, mu12 = mu1 * mu1, mu2 * mu2, mu1 * mu2
    s1 = conv(t * t) - mu1_sq
    s2 = conv(s * s) - mu2_sq
    s12 = conv(t * s) - mu12
    ssim = ((2 * mu12 + C1) * (2 * s12 + C2)) / ((mu1_sq + mu2_sq + C1) * (s1 + s2 + C2))
    ssim_map = 1.0 - ssim
    sigma_step = ALPHA * float(step) + BETA
    gm = np.exp(-(((ssim_map + 1.0) / sigma_step) ** 2)) * MAX_VAL
    return float(np.mean(np.abs(s * gm - t * gm)))


if __name__ == "__main__":
    key = jax.random.PRNGKey(0)
    k1, k2 = jax.random.split(key)
    B, C, H, W = 2, 4, 16, 16
    tgt = jax.random.normal(k1, (B, C, H, W), dtype=jnp.float32)
    src = tgt + 0.1 * jax.random.normal(k2, (B, C, H, W), dtype=jnp.float32)
    step = 2.0   # NOTE: step == 0 would divide by zero (same as the PyTorch module)

    loss = ssim_attention_loss(step, tgt, src)
    loss = jax.block_until_ready(loss)

    ref = _reference_f64(step, np.asarray(tgt), np.asarray(src))
    # Tolerance covers MXU f32 rounding + approx reciprocal on the SSIM denom.
    assert abs(float(loss) - ref) <= max(2e-3 * abs(ref), 1e-6), (float(loss), ref)

    print("KERNEL_OK")
</pallas_src>

<mosaic_0001>
module attributes {stable_mosaic.version = 11 : i64} {
  func.func @_ssim_attention_kernel(%arg0: i32, %arg1: memref<1x1xf32, #tpu.memory_space<smem>>, %arg2: memref<80x80xf32, #tpu.memory_space<vmem>>, %arg3: memref<128x128xf32, #tpu.memory_space<vmem>>, %arg4: memref<16x128xf32, #tpu.memory_space<vmem>>, %arg5: memref<16x128xf32, #tpu.memory_space<vmem>>, %arg6: memref<1x8x128xf32, #tpu.memory_space<vmem>>) attributes {dimension_semantics = [#tpu.dimension_semantics<parallel>], iteration_bounds = array<i64: 1>, scalar_prefetch = 0 : i64, scratch_operands = 0 : i64, tpu.core_type = #tpu.core_type<tc>, window_params = [{transform_indices = @transform_0, window_bounds = array<i64: 1, 1>}, {pipeline_mode = #tpu.pipeline_mode<synchronous>, transform_indices = @transform_1, window_bounds = array<i64: 80, 80>}, {pipeline_mode = #tpu.pipeline_mode<synchronous>, transform_indices = @transform_2, window_bounds = array<i64: 128, 128>}, {transform_indices = @transform_3, window_bounds = array<i64: 16, 128>}, {transform_indices = @transform_4, window_bounds = array<i64: 16, 128>}, {transform_indices = @transform_5, window_bounds = array<i64: 1, 8, 128>}]} {
    %c0 = arith.constant 0 : index
    %c0_0 = arith.constant 0 : index
    %0 = vector.load %arg4[%c0, %c0_0] : memref<16x128xf32, #tpu.memory_space<vmem>>, vector<16x128xf32>
    %c0_1 = arith.constant 0 : index
    %c0_2 = arith.constant 0 : index
    %1 = vector.load %arg5[%c0_1, %c0_2] : memref<16x128xf32, #tpu.memory_space<vmem>>, vector<16x128xf32>
    %c0_3 = arith.constant 0 : index
    %c0_4 = arith.constant 0 : index
    %2 = memref.load %arg1[%c0_3, %c0_4] : memref<1x1xf32, #tpu.memory_space<smem>>
    %cst = arith.constant 1.000000e+00 : f32
    %3 = arith.mulf %cst, %2 : f32
    %cst_5 = arith.constant 0.000000e+00 : f32
    %4 = arith.addf %3, %cst_5 : f32
    %cst_6 = arith.constant 1.000000e+00 : f32
    %5 = arith.divf %cst_6, %4 : f32
    %6 = arith.mulf %0, %0 : vector<16x128xf32>
    %7 = arith.mulf %1, %1 : vector<16x128xf32>
    %8 = arith.mulf %0, %1 : vector<16x128xf32>
    %9 = tpu.concatenate %0, %1, %6, %7, %8 in 0 : vector<16x128xf32>, vector<16x128xf32>, vector<16x128xf32>, vector<16x128xf32>, vector<16x128xf32> -> vector<80x128xf32>
    %c0_7 = arith.constant 0 : index
    %c0_8 = arith.constant 0 : index
    %10 = vector.load %arg3[%c0_7, %c0_8] : memref<128x128xf32, #tpu.memory_space<vmem>>, vector<128x128xf32>
    %cst_9 = arith.constant dense<0.000000e+00> : vector<80x128xf32>
    %11 = tpu.matmul %9, %10, %cst_9 {dimension_numbers = #tpu.dot_dimension_numbers<[1], [0], [0], [1], [0, 0, 1, 1], [], []>} : vector<80x128xf32>, vector<128x128xf32>, vector<80x128xf32> -> vector<80x128xf32>
    %c0_10 = arith.constant 0 : index
    %c0_11 = arith.constant 0 : index
    %12 = vector.load %arg2[%c0_10, %c0_11] : memref<80x80xf32, #tpu.memory_space<vmem>>, vector<80x80xf32>
    %cst_12 = arith.constant dense<0.000000e+00> : vector<80x128xf32>
    %13 = tpu.matmul %12, %11, %cst_12 {dimension_numbers = #tpu.dot_dimension_numbers<[1], [0], [0], [1], [0, 0, 1, 1], [], []>} : vector<80x80xf32>, vector<80x128xf32>, vector<80x128xf32> -> vector<80x128xf32>
    %14 = vector.extract_strided_slice %13 {offsets = [0, 0], sizes = [16, 128], strides = [1, 1]} : vector<80x128xf32> to vector<16x128xf32>
    %15 = vector.extract_strided_slice %13 {offsets = [16, 0], sizes = [16, 128], strides = [1, 1]} : vector<80x128xf32> to vector<16x128xf32>
    %16 = vector.extract_strided_slice %13 {offsets = [32, 0], sizes = [16, 128], strides = [1, 1]} : vector<80x128xf32> to vector<16x128xf32>
    %17 = vector.extract_strided_slice %13 {offsets = [48, 0], sizes = [16, 128], strides = [1, 1]} : vector<80x128xf32> to vector<16x128xf32>
    %18 = vector.extract_strided_slice %13 {offsets = [64, 0], sizes = [16, 128], strides = [1, 1]} : vector<80x128xf32> to vector<16x128xf32>
    %19 = arith.mulf %14, %14 : vector<16x128xf32>
    %20 = arith.mulf %15, %15 : vector<16x128xf32>
    %21 = arith.mulf %14, %15 : vector<16x128xf32>
    %22 = arith.subf %16, %19 : vector<16x128xf32>
    %23 = arith.subf %17, %20 : vector<16x128xf32>
    %24 = arith.subf %18, %21 : vector<16x128xf32>
    %cst_13 = arith.constant 2.000000e+00 : f32
    %25 = vector.broadcast %cst_13 : f32 to vector<16x128xf32>
    %26 = arith.mulf %25, %21 : vector<16x128xf32>
    %cst_14 = arith.constant 9.99999974E-5 : f32
    %27 = vector.broadcast %cst_14 : f32 to vector<16x128xf32>
    %28 = arith.addf %26, %27 : vector<16x128xf32>
    %cst_15 = arith.constant 2.000000e+00 : f32
    %29 = vector.broadcast %cst_15 : f32 to vector<16x128xf32>
    %30 = arith.mulf %29, %24 : vector<16x128xf32>
    %cst_16 = arith.constant 8.99999984E-4 : f32
    %31 = vector.broadcast %cst_16 : f32 to vector<16x128xf32>
    %32 = arith.addf %30, %31 : vector<16x128xf32>
    %33 = arith.mulf %28, %32 : vector<16x128xf32>
    %34 = arith.addf %19, %20 : vector<16x128xf32>
    %cst_17 = arith.constant 9.99999974E-5 : f32
    %35 = vector.broadcast %cst_17 : f32 to vector<16x128xf32>
    %36 = arith.addf %34, %35 : vector<16x128xf32>
    %37 = arith.addf %22, %23 : vector<16x128xf32>
    %cst_18 = arith.constant 8.99999984E-4 : f32
    %38 = vector.broadcast %cst_18 : f32 to vector<16x128xf32>
    %39 = arith.addf %37, %38 : vector<16x128xf32>
    %40 = arith.mulf %36, %39 : vector<16x128xf32>
    %41 = tpu.reciprocal %40 {approx = true} : vector<16x128xf32> -> vector<16x128xf32>
    %42 = arith.mulf %33, %41 : vector<16x128xf32>
    %cst_19 = arith.constant 1.000000e+00 : f32
    %43 = vector.broadcast %cst_19 : f32 to vector<16x128xf32>
    %44 = arith.subf %43, %42 : vector<16x128xf32>
    %cst_20 = arith.constant 1.000000e+00 : f32
    %45 = vector.broadcast %cst_20 : f32 to vector<16x128xf32>
    %46 = arith.addf %44, %45 : vector<16x128xf32>
    %47 = vector.broadcast %5 : f32 to vector<16x128xf32>
    %48 = arith.mulf %46, %47 : vector<16x128xf32>
    %49 = arith.mulf %48, %48 : vector<16x128xf32>
    %cst_21 = arith.constant 0.000000e+00 : f32
    %50 = vector.broadcast %cst_21 : f32 to vector<16x128xf32>
    %51 = arith.subf %50, %49 : vector<16x128xf32>
    %52 = math.exp %51 : vector<16x128xf32>
    %53 = arith.subf %1, %0 : vector<16x128xf32>
    %54 = math.absf %53 : vector<16x128xf32>
    %55 = arith.mulf %52, %54 : vector<16x128xf32>
    %56 = vector.shape_cast %55 : vector<16x128xf32> to vector<1x16x128xf32>
    %cst_22 = arith.constant dense<0.000000e+00> : vector<1xf32>
    %57 = vector.multi_reduction <add>, %56, %cst_22 [1, 2] : vector<1x16x128xf32> to vector<1xf32>
    %58 = vector.shape_cast %57 : vector<1xf32> to vector<1x1x1xf32>
    %59 = vector.extract %58[0, 0, 0] : f32 from vector<1x1x1xf32>
    %60 = vector.broadcast %59 : f32 to vector<1x8x128xf32>
    %c0_23 = arith.constant 0 : index
    %c0_24 = arith.constant 0 : index
    %c0_25 = arith.constant 0 : index
    %61 = vector.load %arg6[%c0_23, %c0_24, %c0_25] : memref<1x8x128xf32, #tpu.memory_space<vmem>>, vector<1x8x128xf32>
    tpu.vector_store %arg6[%c0_23, %c0_24, %c0_25], %60 {strides = array<i32>} : memref<1x8x128xf32, #tpu.memory_space<vmem>>, vector<1x8x128xf32>,
    return
  }
  func.func @transform_0(%arg0: i32) -> (i32, i32) {
    %c0_i32 = arith.constant 0 : i32
    %c0_i32_0 = arith.constant 0 : i32
    %c0_i32_1 = arith.constant 0 : i32
    return %c0_i32, %c0_i32_0 : i32, i32
  }
  func.func @transform_1(%arg0: i32) -> (i32, i32) {
    %c0_i32 = arith.constant 0 : i32
    %c0_i32_0 = arith.constant 0 : i32
    %c0_i32_1 = arith.constant 0 : i32
    return %c0_i32, %c0_i32_0 : i32, i32
  }
  func.func @transform_2(%arg0: i32) -> (i32, i32) {
    %c0_i32 = arith.constant 0 : i32
    %c0_i32_0 = arith.constant 0 : i32
    %c0_i32_1 = arith.constant 0 : i32
    return %c0_i32, %c0_i32_0 : i32, i32
  }
  func.func @transform_3(%arg0: i32) -> (i32, i32) {
    %c0_i32 = arith.constant 0 : i32
    %c0_i32_0 = arith.constant 0 : i32
    return %c0_i32, %arg0 : i32, i32
  }
  func.func @transform_4(%arg0: i32) -> (i32, i32) {
    %c0_i32 = arith.constant 0 : i32
    %c0_i32_0 = arith.constant 0 : i32
    return %c0_i32, %arg0 : i32, i32
  }
  func.func @transform_5(%arg0: i32) -> (i32, i32, i32) {
    %c0_i32 = arith.constant 0 : i32
    %c0_i32_0 = arith.constant 0 : i32
    %c0_i32_1 = arith.constant 0 : i32
    return %arg0, %c0_i32, %c0_i32_0 : i32, i32, i32
  }
}

</mosaic_0001>

<bundles_post_ra>
// kernel: tpu_custom_call.1
= control target key start
LH: loop header
LB: loop body
LE: loop exit
PB: predicated region body
PF: predicated region fallthrough
CT: control target
= control target key end

     0   :  { %11 = vsyncpa [#allocation4], 0  ;;  %s958_s0 = inlined_call_operand.<no memory space> [shape: f32[1,1], index: 0, kind: input, shape index: {}]   ;;  %s959_s1 = inlined_call_operand.hbm [shape: f32[80,80], index: 1, kind: input, shape index: {}]   ;;  %s960_s2 = inlined_call_operand.hbm [shape: f32[128,128], index: 2, kind: input, shape index: {}]   ;;  %s961_s3 = inlined_call_operand.hbm [shape: f32[16,128], index: 3, kind: input, shape index: {}]   ;;  %s962_s4 = inlined_call_operand.hbm [shape: f32[16,128], index: 4, kind: input, shape index: {}]   ;;  %s963_s5 = inlined_call_operand.hbm [shape: f32[1,8,128], index: 5, kind: output, shape index: {}]  }
   0x1   :  { %12 = vsyncpa [#allocation7], 0 }
   0x2   :  { %13 = vsyncpa [#allocation10], 0 }
   0x3   :  { %14 = vsyncpa [#allocation5], 0  ;;  %s794_s18 = smov [#allocation6]   ;;  %s795_s20 = smov [#allocation3]  }
   0x4   :  { %s34_s19 = sshll.u32 %s794_s18, 4  ;;  %s22_s21 = sshll.u32 %s795_s20, 4  ;;  %s35_s19 = int_to_ptr.vmem [resolvable:$true] %s34_s19  ;;  %s831_s21 = int_to_ptr.vmem [resolvable:$true] %s22_s21 }
   0x5   :  { %s676_s24 = scalar_lea.hbm %s960_s2, 2048 }
   0x6   :  { %p677_p0 = scmp.ne.s32.totalorder %s960_s2, %s676_s24  ;;  %p680_p1 = scmp.lt.u32.totalorder %s676_s24, %s960_s2 }
   0x8   :  { %p682_p2 = pnand %p680_p1, %p677_p0 }
   0xa   :  { %685 = shalt.err (!%p682_p2)
}
   0xb   :  { %s686_s29 = scalar_lea.vmem %s35_s19, 2048  ;;  %p691_p4 = scmp.lt.s32.totalorder %s35_s19, %s35_s19 }
   0xc   :  { %p687_p3 = scmp.ne.s32.totalorder %s35_s19, %s686_s29  ;;  %p692_p5 = scmp.lt.s32.totalorder %s686_s29, %s686_s29 }
   0xe   :  { %p693_p6 = por %p692_p5, %p691_p4 }
  0x10   :  { %p694_p7 = pnand %p693_p6, %p687_p3 }
  0x12   :  { %697 = shalt.err (!%p694_p7)
}
  0x13   :  { %s796_s30 = smov 128   ;;  %s797_s6 = smov 8  }
  0x14   :  { %40 = dma.hbm_to_vmem [thread:$0]  %s960_s2, 2048, %s35_s19, [#allocation7], %s796_s30, %s796_s30, %s797_s6  }
  0x15   :  { %s698_s11 = scalar_lea.hbm %s959_s1, 1280 }
  0x16   :  { %p699_p8 = scmp.ne.s32.totalorder %s959_s1, %s698_s11  ;;  %p702_p9 = scmp.lt.u32.totalorder %s698_s11, %s959_s1 }
  0x18   :  { %p704_p10 = pnand %p702_p9, %p699_p8 }
  0x1a   :  { %707 = shalt.err (!%p704_p10)
}
  0x1b   :  { %s708_s16 = scalar_lea.vmem %s831_s21, 1280  ;;  %p713_p12 = scmp.lt.s32.totalorder %s831_s21, %s831_s21 }
  0x1c   :  { %p709_p11 = scmp.ne.s32.totalorder %s831_s21, %s708_s16  ;;  %p714_p13 = scmp.lt.s32.totalorder %s708_s16, %s708_s16 }
  0x1e   :  { %p715_p0 = por %p714_p13, %p713_p12 }
  0x20   :  { %p716_p1 = pnand %p715_p0, %p709_p11 }
  0x22   :  { %719 = shalt.err (!%p716_p1)
}
  0x23   :  { %28 = dma.hbm_to_vmem [thread:$0]  %s959_s1, 1280, %s831_s21, [#allocation4], %s796_s30, %s796_s30, %s797_s6  }
  0x24   :  { %s798_s18 = smov [#allocation8]   ;;  %s799_s20 = smov [#allocation9]  }
  0x25   :  { %s46_s19 = sshll.u32 %s798_s18, 4  ;;  %s58_s22 = sshll.u32 %s799_s20, 4  ;;  %s47_s19 = int_to_ptr.vmem [resolvable:$true] %s46_s19  ;;  %s868_s22 = int_to_ptr.vmem [resolvable:$true] %s58_s22 }
  0x26   :  { %s720_s25 = scalar_lea.hbm %s961_s3, 256 }
  0x27   :  { %p721_p2 = scmp.ne.s32.totalorder %s961_s3, %s720_s25  ;;  %p724_p3 = scmp.lt.u32.totalorder %s720_s25, %s961_s3 }
  0x29   :  { %p726_p4 = pnand %p724_p3, %p721_p2 }
  0x2b   :  { %729 = shalt.err (!%p726_p4)
}
  0x2c   :  { %s730_s1 = scalar_lea.vmem %s47_s19, 256  ;;  %p735_p6 = scmp.lt.s32.totalorder %s47_s19, %s47_s19 }
  0x2d   :  { %p731_p5 = scmp.ne.s32.totalorder %s47_s19, %s730_s1  ;;  %p736_p7 = scmp.lt.s32.totalorder %s730_s1, %s730_s1 }
  0x2f   :  { %p737_p8 = por %p736_p7, %p735_p6 }
  0x31   :  { %p738_p9 = pnand %p737_p8, %p731_p5 }
  0x33   :  { %741 = shalt.err (!%p738_p9)
}
  0x34   :  { %52 = dma.hbm_to_vmem [thread:$0]  %s961_s3, 256, %s47_s19, [#allocation7], %s796_s30, %s796_s30, %s797_s6  }
  0x35   :  { %s742_s10 = scalar_lea.hbm %s962_s4, 256 }
  0x36   :  { %p743_p10 = scmp.ne.s32.totalorder %s962_s4, %s742_s10  ;;  %p746_p11 = scmp.lt.u32.totalorder %s742_s10, %s962_s4 }
  0x38   :  { %p748_p12 = pnand %p746_p11, %p743_p10 }
  0x3a   :  { %751 = shalt.err (!%p748_p12)
}
  0x3b   :  { %s752_s15 = scalar_lea.vmem %s868_s22, 256  ;;  %p757_p0 = scmp.lt.s32.totalorder %s868_s22, %s868_s22 }
  0x3c   :  { %p753_p13 = scmp.ne.s32.totalorder %s868_s22, %s752_s15  ;;  %p758_p1 = scmp.lt.s32.totalorder %s752_s15, %s752_s15 }
  0x3e   :  { %p759_p2 = por %p758_p1, %p757_p0 }
  0x40   :  { %p760_p3 = pnand %p759_p2, %p753_p13 }
  0x42   :  { %763 = shalt.err (!%p760_p3)
}
  0x43   :  { %64 = dma.hbm_to_vmem [thread:$0]  %s962_s4, 256, %s868_s22, [#allocation10], %s796_s30, %s796_s30, %s797_s6  }
  0x44   :  { %786 = dma.done.wait [#allocation4], 1280  }
  0x45   :  { %787 = vsyncadd [#allocation4], 4294966016 }
  0x46   :  { %788 = dma.done.wait [#allocation7], 2304  }
  0x47   :  { %789 = vsyncadd [#allocation7], 4294964992 }
  0x48   :  { %790 = dma.done.wait [#allocation10], 256  }
  0x49   :  { %791 = vsyncadd [#allocation10], 4294967040  ;;  %v92_v0 = vld [vmem:[#allocation6] sm:$0xff]  ;;  %v93_v1 = vld [vmem:[#allocation6 + $0x8] sm:$0xff]  ;;  %vm233_vm0 = vcmask 654336   ;;  %v83_v35 = vstv %s958_s0  ;;  %s800_s6 = smov [#allocation11]  }
  0x4a   :  { %v94_v2 = vld [vmem:[#allocation6 + $0x10] sm:$0xff]  ;;  %v603_v3 = vpack.c.bf16 %v93_v1, %v92_v0  ;;  %v95_v4 = vld [vmem:[#allocation6 + $0x18] sm:$0xff]  ;;  %v96_v6 = vld [vmem:[#allocation6 + $0x20] sm:$0xff]  ;;  %666 = vrcp.f32 %v83_v35  ;;  %s454_s2 = sshll.u32 %s800_s6, 4  ;;  %s455_s2 = int_to_ptr.vmem [resolvable:$true] %s454_s2 }
  0x4b   :  { %v607_v5 = vpack.c.bf16 %v95_v4, %v94_v2  ;;  %v97_v7 = vld [vmem:[#allocation6 + $0x28] sm:$0xff]  ;;  %v905_v9 = vld [vmem:[#allocation8] sm:$0xff]  ;;  %v98_v10 = vld [vmem:[#allocation6 + $0x30] sm:$0xff]  ;;  %s764_s18 = scalar_lea.vmem %s455_s2, 128  ;;  %p769_p5 = scmp.lt.s32.totalorder %s455_s2, %s455_s2 }
  0x4c   :  { %604 = vmatprep.subr.bf16.mxu0 %v603_v3  ;;  %v611_v8 = vpack.c.bf16 %v97_v7, %v96_v6  ;;  %v99_v11 = vld [vmem:[#allocation6 + $0x38] sm:$0xff]  ;;  %553 = vmatprep.mubr.f32.mxu0 %v905_v9  ;;  %v100_v13 = vld [vmem:[#allocation6 + $0x40] sm:$0xff]  ;;  %v101_v14 = vld [vmem:[#allocation6 + $0x48] sm:$0xff]  ;;  %v86_v28 = vmul.f32 %v905_v9, %v905_v9  ;;  %p765_p4 = scmp.ne.s32.totalorder %s455_s2, %s764_s18  ;;  %p770_p6 = scmp.lt.s32.totalorder %s764_s18, %s764_s18 }
  0x4d   :  { %606 = vmatpush3.bf16.msra.mxu0 %v603_v3  ;;  %v615_v12 = vpack.c.bf16 %v99_v11, %v98_v10  ;;  %v619_v15 = vpack.c.bf16 %v101_v14, %v100_v13  ;;  %v102_v16 = vld [vmem:[#allocation6 + $0x50] sm:$0xff]  ;;  %v103_v17 = vld [vmem:[#allocation6 + $0x58] sm:$0xff]  ;;  %v104_v19 = vld [vmem:[#allocation6 + $0x60] sm:$0xff] }
  0x4e   :  { %608 = vmatprep.subr.bf16.mxu0 %v607_v5  ;;  %v623_v18 = vpack.c.bf16 %v103_v17, %v102_v16  ;;  %v105_v20 = vld [vmem:[#allocation6 + $0x68] sm:$0xff]  ;;  %v106_v22 = vld [vmem:[#allocation6 + $0x70] sm:$0xff]  ;;  %v107_v23 = vld [vmem:[#allocation6 + $0x78] sm:$0xff]  ;;  %p771_p7 = por %p770_p6, %p769_p5 }
  0x4f   :  { %v627_v21 = vpack.c.bf16 %v105_v20, %v104_v19  ;;  %v631_v24 = vpack.c.bf16 %v107_v23, %v106_v22  ;;  %v908_v25 = vld [vmem:[#allocation8 + $0x8] sm:$0xff]  ;;  %v910_v26 = vld [vmem:[#allocation9] sm:$0xff]  ;;  %v914_v27 = vld [vmem:[#allocation9 + $0x8] sm:$0xff] }
  0x50   :  { %v87_v29 = vmul.f32 %v908_v25, %v908_v25  ;;  %v88_v30 = vmul.f32 %v910_v26, %v910_v26  ;;  %v89_v31 = vmul.f32 %v914_v27, %v914_v27  ;;  %v90_v32 = vmul.f32 %v910_v26, %v905_v9  ;;  %v223_v34 = vld [vmem:[#allocation3] sm:$0xff]  ;;  %v224_v52 = vld [vmem:[#allocation3 + $0x8] sm:$0xff]  ;;  %v225_v53 = vld [vmem:[#allocation3 + $0x10] sm:$0xff]  ;;  %p772_p8 = pnand %p771_p7, %p765_p4 }
  0x51   :  { %610 = vmatpush3.bf16.msra.mxu0 %v607_v5  ;;  %v91_v33 = vmul.f32 %v914_v27, %v908_v25  ;;  %588 = vmatprep.mubr.msk.f32.mxu1 %vm233_vm0, %v223_v34  ;;  %v226_v54 = vld [vmem:[#allocation3 + $0x18] sm:$0xff]  ;;  %v227_v55 = vld [vmem:[#allocation3 + $0x20] sm:$0xff]  ;;  %v228_v56 = vld [vmem:[#allocation3 + $0x28] sm:$0xff] }
  0x52   :  { %612 = vmatprep.subr.bf16.mxu0 %v611_v8  ;;  %v229_v57 = vld [vmem:[#allocation3 + $0x30] sm:$0xff]  ;;  %v230_v58 = vld [vmem:[#allocation3 + $0x38] sm:$0xff]  ;;  %v231_v59 = vld [vmem:[#allocation3 + $0x40] sm:$0xff] }
  0x53   :  { %v232_v60 = vld [vmem:[#allocation3 + $0x48] sm:$0xff] }
  0x54   :  { %v667_v36 = vpop.eup %666 }
  0x55   :  { %614 = vmatpush3.bf16.msra.mxu0 %v611_v8  ;;  %655 = vpush %v667_v36 }
  0x56   :  { %616 = vmatprep.subr.bf16.mxu0 %v615_v12 }
  0x59   :  { %618 = vmatpush3.bf16.msra.mxu0 %v615_v12 }
  0x5a   :  { %620 = vmatprep.subr.bf16.mxu0 %v619_v15 }
  0x5d   :  { %622 = vmatpush3.bf16.msra.mxu0 %v619_v15 }
  0x5e   :  { %624 = vmatprep.subr.bf16.mxu0 %v623_v18 }
  0x61   :  { %626 = vmatpush3.bf16.msra.mxu0 %v623_v18 }
  0x62   :  { %628 = vmatprep.subr.bf16.mxu0 %v627_v21 }
  0x65   :  { %630 = vmatpush3.bf16.msra.mxu0 %v627_v21 }
  0x66   :  { %632 = vmatprep.subr.bf16.mxu0 %v631_v24 }
  0x69   :  { %634 = vmatpush3.bf16.msra.mxu0 %v631_v24 }
  0x6c   :  { %554 = vmatmul.mubr.f32.vlgmr.msra.gmra.mrb[0].mxu0 %v908_v25 }
  0x6d   :  { %556 = vmatprep.mubr.f32.mxu0 %v910_v26 }
  0x70   :  { %557 = vmatmul.mubr.f32.gmra.mrb[2].mxu0 %v914_v27 }
  0x71   :  { %559 = vmatprep.mubr.f32.mxu0 %v86_v28 }
  0x74   :  { %560 = vmatmul.mubr.f32.gmra.mrb[4].mxu0 %v87_v29 }
  0x75   :  { %562 = vmatprep.mubr.f32.mxu0 %v88_v30 }
  0x78   :  { %563 = vmatmul.mubr.f32.gmra.mrb[6].mxu0 %v89_v31 }
  0x79   :  { %565 = vmatprep.mubr.f32.mxu0 %v90_v32 }
  0x7c   :  { %566 = vmatmul.mubr.f32.gmra.mrb[8].mxu0 %v91_v33 }
  0x86   :  { %s656_s0 = spop %655 }
 0x13f   :  { %v555_v37 = vpop.f32.mrb[0].mxu0 }
 0x140   :  { %v174_v38 = vpop.f32.mrb[1].mxu0 }
 0x141   :  { %v635_v39 = vpack.c.bf16 %v555_v37, %v174_v38 }
 0x143   :  { %v558_v40 = vpop.f32.mrb[2].mxu0  ;;  %636 = vmatprep.subr.bf16.mxu1 %v635_v39 }
 0x144   :  { %v184_v41 = vpop.f32.mrb[3].mxu0  ;;  %638 = vmatpush3.bf16.msra.mxu1 %v635_v39 }
 0x145   :  { %v639_v42 = vpack.c.bf16 %v558_v40, %v184_v41 }
 0x147   :  { %v561_v43 = vpop.f32.mrb[4].mxu0  ;;  %640 = vmatprep.subr.bf16.mxu1 %v639_v42 }
 0x148   :  { %v194_v44 = vpop.f32.mrb[5].mxu0  ;;  %642 = vmatpush3.bf16.msra.mxu1 %v639_v42 }
 0x149   :  { %v643_v45 = vpack.c.bf16 %v561_v43, %v194_v44 }
 0x14b   :  { %v564_v46 = vpop.f32.mrb[6].mxu0  ;;  %644 = vmatprep.subr.bf16.mxu1 %v643_v45 }
 0x14c   :  { %v204_v47 = vpop.f32.mrb[7].mxu0  ;;  %646 = vmatpush3.bf16.msra.mxu1 %v643_v45 }
 0x14d   :  { %v647_v48 = vpack.c.bf16 %v564_v46, %v204_v47 }
 0x14f   :  { %v567_v49 = vpop.f32.mrb[8].mxu0  ;;  %648 = vmatprep.subr.bf16.mxu1 %v647_v48 }
 0x150   :  { %v214_v50 = vpop.f32.mrb[9].mxu0  ;;  %650 = vmatpush3.bf16.msra.mxu1 %v647_v48 }
 0x151   :  { %v651_v51 = vpack.c.bf16 %v567_v49, %v214_v50  ;;  %v419_v49 = vstv %s656_s0 }
 0x153   :  { %652 = vmatprep.subr.bf16.mxu1 %v651_v51 }
 0x154   :  { %654 = vmatpush3.bf16.msra.mxu1 %v651_v51 }
 0x157   :  { %589 = vmatmul.mubr.msk.f32.vlgmr.msra.gmra.mrb[0].mxu1 %vm233_vm0, %v224_v52 }
 0x158   :  { %591 = vmatprep.mubr.msk.f32.mxu1 %vm233_vm0, %v225_v53 }
 0x15b   :  { %592 = vmatmul.mubr.msk.f32.gmra.mrb[2].mxu1 %vm233_vm0, %v226_v54 }
 0x15c   :  { %594 = vmatprep.mubr.msk.f32.mxu1 %vm233_vm0, %v227_v55 }
 0x15f   :  { %595 = vmatmul.mubr.msk.f32.gmra.mrb[4].mxu1 %vm233_vm0, %v228_v56 }
 0x160   :  { %597 = vmatprep.mubr.msk.f32.mxu1 %vm233_vm0, %v229_v57 }
 0x163   :  { %598 = vmatmul.mubr.msk.f32.gmra.mrb[6].mxu1 %vm233_vm0, %v230_v58 }
 0x164   :  { %600 = vmatprep.mubr.msk.f32.mxu1 %vm233_vm0, %v231_v59 }
 0x167   :  { %601 = vmatmul.mubr.msk.f32.gmra.mrb[8].mxu1 %vm233_vm0, %v232_v60  ;;  %v431_v60 = vsub.f32 %v914_v27, %v908_v25 }
 0x22a   :  { %v590_v61 = vpop.f32.mrb[0].mxu1 }
 0x22b   :  { %v330_v62 = vpop.f32.mrb[1].mxu1  ;;  %v380_v0 = vmul.f32 %v590_v61, %v590_v61 }
 0x22c   :  { %v379_v4 = vmul.f32 %v330_v62, %v330_v62 }
 0x22e   :  { %v593_v63 = vpop.f32.mrb[2].mxu1 }
 0x22f   :  { %v382_v1 = vmul.f32 %v593_v63, %v593_v63  ;;  %v384_v2 = vmul.f32 %v593_v63, %v590_v61  ;;  %v340_v3 = vpop.f32.mrb[3].mxu1  ;;  %v430_v61 = vsub.f32 %v910_v26, %v905_v9 }
 0x230   :  { %v381_v5 = vmul.f32 %v340_v3, %v340_v3  ;;  %v383_v6 = vmul.f32 %v340_v3, %v330_v62  ;;  %v433_v62 = vand.u32 2147483647, %v431_v60 }
 0x231   :  { %v402_v7 = vadd.f32 %v382_v1, %v380_v0  ;;  %v392_v21 = vmul.f32 2.0, %v384_v2  ;;  %v432_v63 = vand.u32 2147483647, %v430_v61 }
 0x232   :  { %v401_v8 = vadd.f32 %v381_v5, %v379_v4  ;;  %v596_v10 = vpop.f32.mrb[4].mxu1  ;;  %v391_v29 = vmul.f32 2.0, %v383_v6 }
 0x233   :  { %v386_v11 = vsub.f32 %v596_v10, %v380_v0  ;;  %v350_v12 = vpop.f32.mrb[5].mxu1  ;;  %v404_v22 = vadd.f32 0.0001, %v402_v7  ;;  %v394_v37 = vadd.f32 0.0001, %v392_v21 }
 0x234   :  { %v385_v13 = vsub.f32 %v350_v12, %v379_v4  ;;  %v403_v30 = vadd.f32 0.0001, %v401_v8  ;;  %v393_v39 = vadd.f32 0.0001, %v391_v29 }
 0x236   :  { %v599_v14 = vpop.f32.mrb[6].mxu1 }
 0x237   :  { %v388_v15 = vsub.f32 %v599_v14, %v382_v1  ;;  %v360_v16 = vpop.f32.mrb[7].mxu1 }
 0x238   :  { %v387_v17 = vsub.f32 %v360_v16, %v381_v5 }
 0x239   :  { %v406_v18 = vadd.f32 %v388_v15, %v386_v11 }
 0x23a   :  { %v405_v19 = vadd.f32 %v387_v17, %v385_v13  ;;  %v602_v20 = vpop.f32.mrb[8].mxu1 }
 0x23b   :  { %v408_v23 = vadd.f32 0.0009, %v406_v18  ;;  %v390_v24 = vsub.f32 %v602_v20, %v384_v2  ;;  %v370_v28 = vpop.f32.mrb[9].mxu1 }
 0x23c   :  { %v407_v31 = vadd.f32 0.0009, %v405_v19  ;;  %v389_v32 = vsub.f32 %v370_v28, %v383_v6 }
 0x23d   :  { %v410_v33 = vmul.f32 %v408_v23, %v404_v22  ;;  %v396_v34 = vmul.f32 2.0, %v390_v24 }
 0x23e   :  { %v409_v35 = vmul.f32 %v407_v31, %v403_v30  ;;  %v395_v36 = vmul.f32 2.0, %v389_v32 }
 0x23f   :  { %668 = vrcp.f32 %v410_v33  ;;  %v398_v38 = vadd.f32 0.0009, %v396_v34 }
 0x240   :  { %670 = vrcp.f32 %v409_v35  ;;  %v397_v40 = vadd.f32 0.0009, %v395_v36 }
 0x241   :  { %v400_v41 = vmul.f32 %v398_v38, %v394_v37 }
 0x242   :  { %v399_v42 = vmul.f32 %v397_v40, %v393_v39 }
 0x249   :  { %v669_v43 = vpop.eup %668 }
 0x24a   :  { %v671_v44 = vpop.eup %670  ;;  %v414_v45 = vmul.f32 %v669_v43, %v400_v41 }
 0x24b   :  { %v413_v46 = vmul.f32 %v671_v44, %v399_v42 }
 0x24c   :  { %v416_v47 = vsub.f32 1.0, %v414_v45 }
 0x24d   :  { %v415_v48 = vsub.f32 1.0, %v413_v46 }
 0x24e   :  { %v418_v50 = vadd.f32 1.0, %v416_v47 }
 0x24f   :  { %v417_v51 = vadd.f32 1.0, %v415_v48 }
 0x250   :  { %v421_v52 = vmul.f32 %v419_v49, %v418_v50 }
 0x251   :  { %v420_v53 = vmul.f32 %v419_v49, %v417_v51 }
 0x252   :  { %v423_v54 = vmul.f32 %v421_v52, %v421_v52 }
 0x253   :  { %v422_v55 = vmul.f32 %v420_v53, %v420_v53 }
 0x254   :  { %v425_v56 = vsub.f32 0.0, %v423_v54 }
 0x255   :  { %v424_v57 = vsub.f32 0.0, %v422_v55 }
 0x256   :  { %v428_v58 = vmul.f32 1.442695, %v425_v56 }
 0x257   :  { %v426_v59 = vmul.f32 1.442695, %v424_v57 }
 0x258   :  { %672 = vpow2.f32 %v428_v58 }
 0x259   :  { %674 = vpow2.f32 %v426_v59 }
 0x262   :  { %v673_v0 = vpop.eup %672 }
 0x263   :  { %v675_v1 = vpop.eup %674  ;;  %v435_v2 = vmul.f32 %v673_v0, %v433_v62 }
 0x264   :  { %v434_v3 = vmul.f32 %v675_v1, %v432_v63 }
 0x266   :  { %v436_v4 = vadd.f32 %v435_v2, %v434_v3 }
 0x268   :  { %437 = vadd.xlane.f32.xlu0 %v436_v4 }
 0x2f5   :  { %v438_v5 = vpop.xlane.xlu0 %437 }
 0x2f6   :  { %v439_v6 = vrot.slane %v438_v5, 4 }
 0x2f8   :  { %v440_v7 = vadd.f32 %v439_v6, %v438_v5 }
 0x2fa   :  { %v441_v8 = vrot.slane %v440_v7, 2 }
 0x2fc   :  { %v442_v10 = vadd.f32 %v441_v8, %v440_v7 }
 0x2fe   :  { %v443_v11 = vrot.slane %v442_v10, 1 }
 0x300   :  { %v444_v12 = vadd.f32 %v443_v11, %v442_v10 }
 0x302   :  { %657 = vpush %v444_v12 }
 0x333   :  { %s658_s17 = spop %657 }
 0x334   :  { %v446_v9 = vstv %s658_s17 }
 0x335   :  { %447 = vst [vmem:[#allocation11] sm:$0xff] %v446_v9 }
 0x336   :  { %775 = shalt.err (!%p772_p8)
}
 0x337   :  { %s776_s22 = scalar_lea.hbm %s963_s5, 128 }
 0x338   :  { %p777_p9 = scmp.ne.s32.totalorder %s963_s5, %s776_s22  ;;  %p780_p10 = scmp.lt.u32.totalorder %s776_s22, %s963_s5 }
 0x33a   :  { %p782_p11 = pnand %p780_p10, %p777_p9 }
 0x33c   :  { %785 = shalt.err (!%p782_p11)
}
 0x33d   :  { %457 = dma.vmem_to_hbm [thread:$0]  %s455_s2, 128, %s963_s5, [#allocation5]  }
 0x33e   :  { %792 = dma.done.wait [#allocation5], 128  }
 0x33f   :  { %793 = vsyncadd [#allocation5], 4294967168 }
 0x340   :  { %461 = vsyncpa [#allocation4], 1 }
 0x341   :  { %462 = vsyncpa [#allocation7], 1 }
 0x342   :  { %463 = vsyncpa [#allocation10], 1 }
 0x343   :  { %464 = vsyncpa [#allocation5], 1 }

</bundles_post_ra>
